<compile_context>
chip_gen: v6e
topology: v6e:2x2x1
jax: 0.10.0
libtpu: 0.0.40
codegen_flags: <defaults>
</compile_context>

<pallas_src>
import functools

import jax
import jax.numpy as jnp
from jax.experimental import pallas as pl
from jax.experimental.pallas import tpu as pltpu

SCALE = 3


def _vmem_capacity_bytes():
    try:
        return int(pltpu.get_tpu_info().vmem_capacity_bytes)
    except Exception:
        return 64 * 1024 * 1024  # conservative fallback (v7x per-TC VMEM)


def _choose_fold(m, w):
    """Fold G input rows per kernel row so the folded input width G*W is
    lane-dense (~>=128 lanes).  G must divide M (keeps the reshape free) and
    is capped to keep the unrolled in-kernel loop small."""
    if w >= 128:
        return 1
    target = min(max(1, 128 // w), 16, m)
    for g in range(target, 0, -1):
        if m % g == 0:
            return g
    return 1


def _choose_block_rows(m_rows, g, w, itemsize):
    """Row tile from a VMEM budget (no forced step count).  Live VMEM per step
    ~= double-buffered in + out tiles = 2*(G*W + G*9W)*mt*itemsize."""
    budget = int(_vmem_capacity_bytes() * 0.40)
    per_row = 2 * (g * w + g * SCALE * SCALE * w) * itemsize
    sub = max(8, 32 // itemsize)  # sublane packing: 8 f32 / 16 bf16 / 32 int8
    mt = max(sub, budget // max(1, per_row))
    mt = max(sub, (mt // sub) * sub)
    return m_rows if mt >= m_rows else mt


def _upsample_kernel(x_ref, r_ref, o_ref, *, g, w):
    # x_ref: (Mt, G*W) folded input rows.
    # r_ref: (W, 3W)   resident 0/1 replication matrix (W-interleave).
    # o_ref: (Mt, G*9W) lane-dense folded output rows.
    wo = SCALE * w
    x = x_ref[...]
    r = r_ref[...]
    for gi in range(g):
        xg = x[:, gi * w:(gi + 1) * w]
        # W-interleave: (Mt, W) @ (W, 3W); exact (one 1*x term per output).
        y = jnp.dot(xg, r, preferred_element_type=o_ref.dtype).astype(o_ref.dtype)
        base = gi * SCALE * wo
        for a in range(SCALE):  # H replication: three contiguous stores
            o_ref[:, base + a * wo: base + (a + 1) * wo] = y


@jax.jit
def upsample2d_3x3(x):
    """Nearest-neighbor upsample by 3 along H and W.  x: (N, C, H, W), float."""
    if not jnp.issubdtype(x.dtype, jnp.floating):
        # TODO(synk): integer inputs would need a non-MXU replication path
        # (v7x MXU has no integer mode); reject instead of silently casting.
        raise TypeError(f"upsample2d_3x3 expects a float dtype, got {x.dtype}")

    n, c, h, w = x.shape
    m = n * c * h
    itemsize = jnp.dtype(x.dtype).itemsize

    g = _choose_fold(m, w)
    m_rows = m // g
    win = g * w                          # folded input row width
    wout = g * SCALE * SCALE * w         # folded output row width (G*9W)
    mt = _choose_block_rows(m_rows, g, w, itemsize)
    grid = (pl.cdiv(m_rows, mt),)

    # Grid-invariant replication matrix, built once outside the kernel:
    # r_mat[r, k] = 1 iff k // 3 == r.
    col = jax.lax.broadcasted_iota(jnp.int32, (w, SCALE * w), 1)
    row = jax.lax.broadcasted_iota(jnp.int32, (w, SCALE * w), 0)
    r_mat = (col // SCALE == row).astype(x.dtype)

    xf = x.reshape(m_rows, win)          # free contiguous reshape

    vmem_limit = min(int(_vmem_capacity_bytes() * 0.75), 128 * 1024 * 1024)

    out_flat = pl.pallas_call(
        functools.partial(_upsample_kernel, g=g, w=w),
        out_shape=jax.ShapeDtypeStruct((m_rows, wout), x.dtype),
        grid=grid,
        in_specs=[
            pl.BlockSpec((mt, win), lambda i: (i, 0)),
            pl.BlockSpec((w, SCALE * w), lambda i: (0, 0)),  # resident, DMA'd once
        ],
        out_specs=pl.BlockSpec((mt, wout), lambda i: (i, 0)),
        compiler_params=pltpu.CompilerParams(
            dimension_semantics=("parallel",),
            vmem_limit_bytes=vmem_limit,
        ),
        cost_estimate=pl.CostEstimate(
            flops=2 * m * w * SCALE * w,
            transcendentals=0,
            bytes_accessed=(1 + SCALE * SCALE) * m * w * itemsize,
        ),
    )(xf, r_mat)

    # Free reshape: (M/G, G*9W) row-major is bit-identical to (N, C, 3H, 3W).
    return out_flat.reshape(n, c, SCALE * h, SCALE * w)


if __name__ == "__main__":
    key = jax.random.PRNGKey(0)
    x = jax.random.normal(key, (2, 4, 16, 16), dtype=jnp.float32)

    y = upsample2d_3x3(x)
    jax.block_until_ready(y)

    # Reference: pure-JAX nearest upsample (matches F.interpolate(mode='nearest')).
    y_ref = jnp.repeat(jnp.repeat(x, SCALE, axis=2), SCALE, axis=3)

    assert y.shape == (2, 4, 48, 48), y.shape
    assert y.dtype == x.dtype, y.dtype
    assert bool(jnp.array_equal(y, y_ref)), "mismatch vs reference"

    print("KERNEL_OK")
</pallas_src>

<mosaic_0001>
module attributes {stable_mosaic.version = 11 : i64} {
  func.func @_upsample_kernel(%arg0: i32, %arg1: memref<16x128xf32, #tpu.memory_space<vmem>>, %arg2: memref<16x48xf32, #tpu.memory_space<vmem>>, %arg3: memref<16x1152xf32, #tpu.memory_space<vmem>>) attributes {dimension_semantics = [#tpu.dimension_semantics<parallel>], iteration_bounds = array<i64: 1>, scalar_prefetch = 0 : i64, scratch_operands = 0 : i64, tpu.core_type = #tpu.core_type<tc>, window_params = [{transform_indices = @transform_0, window_bounds = array<i64: 16, 128>}, {pipeline_mode = #tpu.pipeline_mode<synchronous>, transform_indices = @transform_1, window_bounds = array<i64: 16, 48>}, {transform_indices = @transform_2, window_bounds = array<i64: 16, 1152>}]} {
    %c0 = arith.constant 0 : index
    %c0_0 = arith.constant 0 : index
    %0 = vector.load %arg1[%c0, %c0_0] : memref<16x128xf32, #tpu.memory_space<vmem>>, vector<16x128xf32>
    %c0_1 = arith.constant 0 : index
    %c0_2 = arith.constant 0 : index
    %1 = vector.load %arg2[%c0_1, %c0_2] : memref<16x48xf32, #tpu.memory_space<vmem>>, vector<16x48xf32>
    %2 = vector.extract_strided_slice %0 {offsets = [0, 0], sizes = [16, 16], strides = [1, 1]} : vector<16x128xf32> to vector<16x16xf32>
    %cst = arith.constant dense<0.000000e+00> : vector<16x48xf32>
    %3 = tpu.matmul %2, %1, %cst {dimension_numbers = #tpu.dot_dimension_numbers<[1], [0], [0], [1], [0, 0, 1, 1], [], []>} : vector<16x16xf32>, vector<16x48xf32>, vector<16x48xf32> -> vector<16x48xf32>
    %c0_3 = arith.constant 0 : index
    %c0_4 = arith.constant 0 : index
    %4 = vector.load %arg3[%c0_3, %c0_4] : memref<16x1152xf32, #tpu.memory_space<vmem>>, vector<16x48xf32>
    tpu.vector_store %arg3[%c0_3, %c0_4], %3 {strides = array<i32>} : memref<16x1152xf32, #tpu.memory_space<vmem>>, vector<16x48xf32>,
    %c0_5 = arith.constant 0 : index
    %c48 = arith.constant 48 : index
    %5 = vector.load %arg3[%c0_5, %c48] : memref<16x1152xf32, #tpu.memory_space<vmem>>, vector<16x48xf32>
    tpu.vector_store %arg3[%c0_5, %c48], %3 {strides = array<i32>} : memref<16x1152xf32, #tpu.memory_space<vmem>>, vector<16x48xf32>,
    %c0_6 = arith.constant 0 : index
    %c96 = arith.constant 96 : index
    %6 = vector.load %arg3[%c0_6, %c96] : memref<16x1152xf32, #tpu.memory_space<vmem>>, vector<16x48xf32>
    tpu.vector_store %arg3[%c0_6, %c96], %3 {strides = array<i32>} : memref<16x1152xf32, #tpu.memory_space<vmem>>, vector<16x48xf32>,
    %7 = vector.extract_strided_slice %0 {offsets = [0, 16], sizes = [16, 16], strides = [1, 1]} : vector<16x128xf32> to vector<16x16xf32>
    %cst_7 = arith.constant dense<0.000000e+00> : vector<16x48xf32>
    %8 = tpu.matmul %7, %1, %cst_7 {dimension_numbers = #tpu.dot_dimension_numbers<[1], [0], [0], [1], [0, 0, 1, 1], [], []>} : vector<16x16xf32>, vector<16x48xf32>, vector<16x48xf32> -> vector<16x48xf32>
    %c0_8 = arith.constant 0 : index
    %c144 = arith.constant 144 : index
    %9 = vector.load %arg3[%c0_8, %c144] : memref<16x1152xf32, #tpu.memory_space<vmem>>, vector<16x48xf32>
    tpu.vector_store %arg3[%c0_8, %c144], %8 {strides = array<i32>} : memref<16x1152xf32, #tpu.memory_space<vmem>>, vector<16x48xf32>,
    %c0_9 = arith.constant 0 : index
    %c192 = arith.constant 192 : index
    %10 = vector.load %arg3[%c0_9, %c192] : memref<16x1152xf32, #tpu.memory_space<vmem>>, vector<16x48xf32>
    tpu.vector_store %arg3[%c0_9, %c192], %8 {strides = array<i32>} : memref<16x1152xf32, #tpu.memory_space<vmem>>, vector<16x48xf32>,
    %c0_10 = arith.constant 0 : index
    %c240 = arith.constant 240 : index
    %11 = vector.load %arg3[%c0_10, %c240] : memref<16x1152xf32, #tpu.memory_space<vmem>>, vector<16x48xf32>
    tpu.vector_store %arg3[%c0_10, %c240], %8 {strides = array<i32>} : memref<16x1152xf32, #tpu.memory_space<vmem>>, vector<16x48xf32>,
    %12 = vector.extract_strided_slice %0 {offsets = [0, 32], sizes = [16, 16], strides = [1, 1]} : vector<16x128xf32> to vector<16x16xf32>
    %cst_11 = arith.constant dense<0.000000e+00> : vector<16x48xf32>
    %13 = tpu.matmul %12, %1, %cst_11 {dimension_numbers = #tpu.dot_dimension_numbers<[1], [0], [0], [1], [0, 0, 1, 1], [], []>} : vector<16x16xf32>, vector<16x48xf32>, vector<16x48xf32> -> vector<16x48xf32>
    %c0_12 = arith.constant 0 : index
    %c288 = arith.constant 288 : index
    %14 = vector.load %arg3[%c0_12, %c288] : memref<16x1152xf32, #tpu.memory_space<vmem>>, vector<16x48xf32>
    tpu.vector_store %arg3[%c0_12, %c288], %13 {strides = array<i32>} : memref<16x1152xf32, #tpu.memory_space<vmem>>, vector<16x48xf32>,
    %c0_13 = arith.constant 0 : index
    %c336 = arith.constant 336 : index
    %15 = vector.load %arg3[%c0_13, %c336] : memref<16x1152xf32, #tpu.memory_space<vmem>>, vector<16x48xf32>
    tpu.vector_store %arg3[%c0_13, %c336], %13 {strides = array<i32>} : memref<16x1152xf32, #tpu.memory_space<vmem>>, vector<16x48xf32>,
    %c0_14 = arith.constant 0 : index
    %c384 = arith.constant 384 : index
    %16 = vector.load %arg3[%c0_14, %c384] : memref<16x1152xf32, #tpu.memory_space<vmem>>, vector<16x48xf32>
    tpu.vector_store %arg3[%c0_14, %c384], %13 {strides = array<i32>} : memref<16x1152xf32, #tpu.memory_space<vmem>>, vector<16x48xf32>,
    %17 = vector.extract_strided_slice %0 {offsets = [0, 48], sizes = [16, 16], strides = [1, 1]} : vector<16x128xf32> to vector<16x16xf32>
    %cst_15 = arith.constant dense<0.000000e+00> : vector<16x48xf32>
    %18 = tpu.matmul %17, %1, %cst_15 {dimension_numbers = #tpu.dot_dimension_numbers<[1], [0], [0], [1], [0, 0, 1, 1], [], []>} : vector<16x16xf32>, vector<16x48xf32>, vector<16x48xf32> -> vector<16x48xf32>
    %c0_16 = arith.constant 0 : index
    %c432 = arith.constant 432 : index
    %19 = vector.load %arg3[%c0_16, %c432] : memref<16x1152xf32, #tpu.memory_space<vmem>>, vector<16x48xf32>
    tpu.vector_store %arg3[%c0_16, %c432], %18 {strides = array<i32>} : memref<16x1152xf32, #tpu.memory_space<vmem>>, vector<16x48xf32>,
    %c0_17 = arith.constant 0 : index
    %c480 = arith.constant 480 : index
    %20 = vector.load %arg3[%c0_17, %c480] : memref<16x1152xf32, #tpu.memory_space<vmem>>, vector<16x48xf32>
    tpu.vector_store %arg3[%c0_17, %c480], %18 {strides = array<i32>} : memref<16x1152xf32, #tpu.memory_space<vmem>>, vector<16x48xf32>,
    %c0_18 = arith.constant 0 : index
    %c528 = arith.constant 528 : index
    %21 = vector.load %arg3[%c0_18, %c528] : memref<16x1152xf32, #tpu.memory_space<vmem>>, vector<16x48xf32>
    tpu.vector_store %arg3[%c0_18, %c528], %18 {strides = array<i32>} : memref<16x1152xf32, #tpu.memory_space<vmem>>, vector<16x48xf32>,
    %22 = vector.extract_strided_slice %0 {offsets = [0, 64], sizes = [16, 16], strides = [1, 1]} : vector<16x128xf32> to vector<16x16xf32>
    %cst_19 = arith.constant dense<0.000000e+00> : vector<16x48xf32>
    %23 = tpu.matmul %22, %1, %cst_19 {dimension_numbers = #tpu.dot_dimension_numbers<[1], [0], [0], [1], [0, 0, 1, 1], [], []>} : vector<16x16xf32>, vector<16x48xf32>, vector<16x48xf32> -> vector<16x48xf32>
    %c0_20 = arith.constant 0 : index
    %c576 = arith.constant 576 : index
    %24 = vector.load %arg3[%c0_20, %c576] : memref<16x1152xf32, #tpu.memory_space<vmem>>, vector<16x48xf32>
    tpu.vector_store %arg3[%c0_20, %c576], %23 {strides = array<i32>} : memref<16x1152xf32, #tpu.memory_space<vmem>>, vector<16x48xf32>,
    %c0_21 = arith.constant 0 : index
    %c624 = arith.constant 624 : index
    %25 = vector.load %arg3[%c0_21, %c624] : memref<16x1152xf32, #tpu.memory_space<vmem>>, vector<16x48xf32>
    tpu.vector_store %arg3[%c0_21, %c624], %23 {strides = array<i32>} : memref<16x1152xf32, #tpu.memory_space<vmem>>, vector<16x48xf32>,
    %c0_22 = arith.constant 0 : index
    %c672 = arith.constant 672 : index
    %26 = vector.load %arg3[%c0_22, %c672] : memref<16x1152xf32, #tpu.memory_space<vmem>>, vector<16x48xf32>
    tpu.vector_store %arg3[%c0_22, %c672], %23 {strides = array<i32>} : memref<16x1152xf32, #tpu.memory_space<vmem>>, vector<16x48xf32>,
    %27 = vector.extract_strided_slice %0 {offsets = [0, 80], sizes = [16, 16], strides = [1, 1]} : vector<16x128xf32> to vector<16x16xf32>
    %cst_23 = arith.constant dense<0.000000e+00> : vector<16x48xf32>
    %28 = tpu.matmul %27, %1, %cst_23 {dimension_numbers = #tpu.dot_dimension_numbers<[1], [0], [0], [1], [0, 0, 1, 1], [], []>} : vector<16x16xf32>, vector<16x48xf32>, vector<16x48xf32> -> vector<16x48xf32>
    %c0_24 = arith.constant 0 : index
    %c720 = arith.constant 720 : index
    %29 = vector.load %arg3[%c0_24, %c720] : memref<16x1152xf32, #tpu.memory_space<vmem>>, vector<16x48xf32>
    tpu.vector_store %arg3[%c0_24, %c720], %28 {strides = array<i32>} : memref<16x1152xf32, #tpu.memory_space<vmem>>, vector<16x48xf32>,
    %c0_25 = arith.constant 0 : index
    %c768 = arith.constant 768 : index
    %30 = vector.load %arg3[%c0_25, %c768] : memref<16x1152xf32, #tpu.memory_space<vmem>>, vector<16x48xf32>
    tpu.vector_store %arg3[%c0_25, %c768], %28 {strides = array<i32>} : memref<16x1152xf32, #tpu.memory_space<vmem>>, vector<16x48xf32>,
    %c0_26 = arith.constant 0 : index
    %c816 = arith.constant 816 : index
    %31 = vector.load %arg3[%c0_26, %c816] : memref<16x1152xf32, #tpu.memory_space<vmem>>, vector<16x48xf32>
    tpu.vector_store %arg3[%c0_26, %c816], %28 {strides = array<i32>} : memref<16x1152xf32, #tpu.memory_space<vmem>>, vector<16x48xf32>,
    %32 = vector.extract_strided_slice %0 {offsets = [0, 96], sizes = [16, 16], strides = [1, 1]} : vector<16x128xf32> to vector<16x16xf32>
    %cst_27 = arith.constant dense<0.000000e+00> : vector<16x48xf32>
    %33 = tpu.matmul %32, %1, %cst_27 {dimension_numbers = #tpu.dot_dimension_numbers<[1], [0], [0], [1], [0, 0, 1, 1], [], []>} : vector<16x16xf32>, vector<16x48xf32>, vector<16x48xf32> -> vector<16x48xf32>
    %c0_28 = arith.constant 0 : index
    %c864 = arith.constant 864 : index
    %34 = vector.load %arg3[%c0_28, %c864] : memref<16x1152xf32, #tpu.memory_space<vmem>>, vector<16x48xf32>
    tpu.vector_store %arg3[%c0_28, %c864], %33 {strides = array<i32>} : memref<16x1152xf32, #tpu.memory_space<vmem>>, vector<16x48xf32>,
    %c0_29 = arith.constant 0 : index
    %c912 = arith.constant 912 : index
    %35 = vector.load %arg3[%c0_29, %c912] : memref<16x1152xf32, #tpu.memory_space<vmem>>, vector<16x48xf32>
    tpu.vector_store %arg3[%c0_29, %c912], %33 {strides = array<i32>} : memref<16x1152xf32, #tpu.memory_space<vmem>>, vector<16x48xf32>,
    %c0_30 = arith.constant 0 : index
    %c960 = arith.constant 960 : index
    %36 = vector.load %arg3[%c0_30, %c960] : memref<16x1152xf32, #tpu.memory_space<vmem>>, vector<16x48xf32>
    tpu.vector_store %arg3[%c0_30, %c960], %33 {strides = array<i32>} : memref<16x1152xf32, #tpu.memory_space<vmem>>, vector<16x48xf32>,
    %37 = vector.extract_strided_slice %0 {offsets = [0, 112], sizes = [16, 16], strides = [1, 1]} : vector<16x128xf32> to vector<16x16xf32>
    %cst_31 = arith.constant dense<0.000000e+00> : vector<16x48xf32>
    %38 = tpu.matmul %37, %1, %cst_31 {dimension_numbers = #tpu.dot_dimension_numbers<[1], [0], [0], [1], [0, 0, 1, 1], [], []>} : vector<16x16xf32>, vector<16x48xf32>, vector<16x48xf32> -> vector<16x48xf32>
    %c0_32 = arith.constant 0 : index
    %c1008 = arith.constant 1008 : index
    %39 = vector.load %arg3[%c0_32, %c1008] : memref<16x1152xf32, #tpu.memory_space<vmem>>, vector<16x48xf32>
    tpu.vector_store %arg3[%c0_32, %c1008], %38 {strides = array<i32>} : memref<16x1152xf32, #tpu.memory_space<vmem>>, vector<16x48xf32>,
    %c0_33 = arith.constant 0 : index
    %c1056 = arith.constant 1056 : index
    %40 = vector.load %arg3[%c0_33, %c1056] : memref<16x1152xf32, #tpu.memory_space<vmem>>, vector<16x48xf32>
    tpu.vector_store %arg3[%c0_33, %c1056], %38 {strides = array<i32>} : memref<16x1152xf32, #tpu.memory_space<vmem>>, vector<16x48xf32>,
    %c0_34 = arith.constant 0 : index
    %c1104 = arith.constant 1104 : index
    %41 = vector.load %arg3[%c0_34, %c1104] : memref<16x1152xf32, #tpu.memory_space<vmem>>, vector<16x48xf32>
    tpu.vector_store %arg3[%c0_34, %c1104], %38 {strides = array<i32>} : memref<16x1152xf32, #tpu.memory_space<vmem>>, vector<16x48xf32>,
    return
  }
  func.func @transform_0(%arg0: i32) -> (i32, i32) {
    %c0_i32 = arith.constant 0 : i32
    %c0_i32_0 = arith.constant 0 : i32
    return %arg0, %c0_i32 : i32, i32
  }
  func.func @transform_1(%arg0: i32) -> (i32, i32) {
    %c0_i32 = arith.constant 0 : i32
    %c0_i32_0 = arith.constant 0 : i32
    %c0_i32_1 = arith.constant 0 : i32
    return %c0_i32, %c0_i32_0 : i32, i32
  }
  func.func @transform_2(%arg0: i32) -> (i32, i32) {
    %c0_i32 = arith.constant 0 : i32
    %c0_i32_0 = arith.constant 0 : i32
    return %arg0, %c0_i32 : i32, i32
  }
}

</mosaic_0001>

<bundles_post_ra>
// kernel: upsample2d_3x3.1
= control target key start
LH: loop header
LB: loop body
LE: loop exit
PB: predicated region body
PF: predicated region fallthrough
CT: control target
= control target key end

     0   :  { %vm15_vm0 = vcmask 130048   ;;  %s1004_s13 = smov 112   ;;  %s1005_s14 = smov 96   ;;  %vm97_vm1 = vcmask 392192   ;;  %vm108_vm2 = vcmask 785792   ;;  %vm117_vm3 = vcmask 1048320   ;;  %s1386_s0 = inlined_call_operand.vmem [shape: f32[16,128], index: 0, kind: input, shape index: {}]   ;;  %s1387_s1 = inlined_call_operand.vmem [shape: f32[16,48], index: 1, kind: input, shape index: {}]   ;;  %s1388_s2 = inlined_call_operand.vmem [shape: f32[16,1152], index: 2, kind: output, shape index: {}]  }
   0x1   :  { %v11_v0 = vld [vmem:[%s1386_s0] sm:$0xff]  ;;  %v1032_v1 = vld [vmem:[%s1387_s1 + $0x8] sm:$0xff]  ;;  %s1008_s19 = smov 48   ;;  %s1009_s20 = smov 32   ;;  %vm213_vm4 = vcmask 523392   ;;  %vm222_vm5 = vcmask 916992  }
   0x2   :  { %122 = vrot.lane.b32.xlu0 %v11_v0, %s1004_s13  ;;  %237 = vrot.lane.b32.xlu1 %v11_v0, %s1005_s14  ;;  %v1039_v2 = vld [vmem:[%s1387_s1] sm:$0xff]  ;;  %v12_v3 = vld [vmem:[%s1386_s0 + $0x8] sm:$0xff]  ;;  %s1006_s0 = smov 80   ;;  %s1007_s1 = smov 64   ;;  %vm231_vm6 = vcmask 1048448   ;;  %vm233_vm7 = vcmask 261120  }
   0x3   :  { %941 = vmatprep.subr.mxu0 %v1032_v1  ;;  %945 = vmatprep.mubr.msk.f32.mxu0 %vm15_vm0, %v11_v0  ;;  %s1010_s21 = smov 16   ;;  %vm328_vm8 = vcmask 654592   ;;  %vm337_vm9 = vcmask 1048192  }
   0x4   :  { %942 = vmatpush3.msra.mxu0 %v1032_v1  ;;  %948 = vmatprep.subr.mxu1 %v1032_v1 }
   0x5   :  { %943 = vmatprep.subr.mxu0 %v1039_v2  ;;  %949 = vmatpush3.msra.mxu1 %v1032_v1 }
   0x6   :  { %124 = vrot.lane.b32.xlu0 %v12_v3, %s1004_s13  ;;  %239 = vrot.lane.b32.xlu1 %v12_v3, %s1005_s14 }
   0x7   :  { %944 = vmatpush3.msra.mxu0 %v1039_v2  ;;  %950 = vmatprep.subr.mxu1 %v1039_v2 }
   0x8   :  { %946 = vmatmul.mubr.msk.f32.vlgmr.msra.gmra.mxu0 %vm15_vm0, %v12_v3  ;;  %951 = vmatpush3.msra.mxu1 %v1039_v2 }
   0x9   :  { %955 = vmatprep.subr.mxu0 %v1032_v1  ;;  %962 = vmatprep.subr.mxu1 %v1032_v1 }
   0xa   :  { %342 = vrot.lane.b32.xlu0 %v11_v0, %s1006_s0  ;;  %344 = vrot.lane.b32.xlu1 %v12_v3, %s1006_s0 }
   0xb   :  { %956 = vmatpush3.msra.mxu0 %v1032_v1 }
   0xc   :  { %957 = vmatprep.subr.mxu0 %v1039_v2 }
   0xd   :  { %958 = vmatpush3.msra.mxu0 %v1039_v2 }
   0xe   :  { %453 = vrot.lane.b32.xlu0 %v11_v0, %s1007_s1  ;;  %455 = vrot.lane.b32.xlu1 %v12_v3, %s1007_s1 }
   0xf   :  { %969 = vmatprep.subr.mxu0 %v1032_v1 }
  0x12   :  { %564 = vrot.lane.b32.xlu0 %v11_v0, %s1008_s19  ;;  %566 = vrot.lane.b32.xlu1 %v12_v3, %s1008_s19 }
  0x16   :  { %667 = vrot.lane.b32.xlu0 %v11_v0, %s1009_s20  ;;  %669 = vrot.lane.b32.xlu1 %v12_v3, %s1009_s20 }
  0x1a   :  { %778 = vrot.lane.b32.xlu0 %v11_v0, %s1010_s21  ;;  %780 = vrot.lane.b32.xlu1 %v12_v3, %s1010_s21 }
  0x74   :  { %v123_v4 = vpop.permute.xlu0 %122  ;;  %v238_v5 = vpop.permute.xlu1 %237 }
  0x75   :  { %952 = vmatprep.mubr.msk.f32.mxu1 %vm15_vm0, %v123_v4  ;;  %959 = vmatprep.mubr.msk.f32.mxu0 %vm15_vm0, %v238_v5 }
  0x78   :  { %v125_v6 = vpop.permute.xlu0 %124  ;;  %v240_v7 = vpop.permute.xlu1 %239 }
  0x79   :  { %953 = vmatmul.mubr.msk.f32.vlgmr.msra.gmra.mxu1 %vm15_vm0, %v125_v6  ;;  %960 = vmatmul.mubr.msk.f32.vlgmr.msra.gmra.mxu0 %vm15_vm0, %v240_v7 }
  0x7a   :  { %963 = vmatpush3.msra.mxu1 %v1032_v1  ;;  %970 = vmatpush3.msra.mxu0 %v1032_v1 }
  0x7b   :  { %964 = vmatprep.subr.mxu1 %v1039_v2  ;;  %971 = vmatprep.subr.mxu0 %v1039_v2 }
  0x7c   :  { %v343_v8 = vpop.permute.xlu0 %342  ;;  %v345_v9 = vpop.permute.xlu1 %344  ;;  %965 = vmatpush3.msra.mxu1 %v1039_v2  ;;  %972 = vmatpush3.msra.mxu0 %v1039_v2 }
  0x7d   :  { %966 = vmatprep.mubr.msk.f32.mxu1 %vm15_vm0, %v343_v8  ;;  %976 = vmatprep.subr.mxu1 %v1032_v1 }
  0x7e   :  { %967 = vmatmul.mubr.msk.f32.vlgmr.msra.gmra.mxu1 %vm15_vm0, %v345_v9  ;;  %983 = vmatprep.subr.mxu0 %v1032_v1 }
  0x7f   :  { %977 = vmatpush3.msra.mxu1 %v1032_v1 }
  0x80   :  { %v454_v10 = vpop.permute.xlu0 %453  ;;  %v456_v11 = vpop.permute.xlu1 %455  ;;  %978 = vmatprep.subr.mxu1 %v1039_v2 }
  0x81   :  { %973 = vmatprep.mubr.msk.f32.mxu0 %vm15_vm0, %v454_v10  ;;  %979 = vmatpush3.msra.mxu1 %v1039_v2 }
  0x82   :  { %974 = vmatmul.mubr.msk.f32.vlgmr.msra.gmra.mxu0 %vm15_vm0, %v456_v11  ;;  %990 = vmatprep.subr.mxu1 %v1032_v1 }
  0x83   :  { %984 = vmatpush3.msra.mxu0 %v1032_v1 }
  0x84   :  { %v565_v12 = vpop.permute.xlu0 %564  ;;  %v567_v13 = vpop.permute.xlu1 %566  ;;  %985 = vmatprep.subr.mxu0 %v1039_v2 }
  0x85   :  { %980 = vmatprep.mubr.msk.f32.mxu1 %vm15_vm0, %v565_v12  ;;  %986 = vmatpush3.msra.mxu0 %v1039_v2 }
  0x86   :  { %981 = vmatmul.mubr.msk.f32.vlgmr.msra.gmra.mxu1 %vm15_vm0, %v567_v13 }
  0x87   :  { %991 = vmatpush3.msra.mxu1 %v1032_v1 }
  0x88   :  { %v668_v14 = vpop.permute.xlu0 %667  ;;  %v670_v15 = vpop.permute.xlu1 %669  ;;  %992 = vmatprep.subr.mxu1 %v1039_v2 }
  0x89   :  { %987 = vmatprep.mubr.msk.f32.mxu0 %vm15_vm0, %v668_v14  ;;  %993 = vmatpush3.msra.mxu1 %v1039_v2 }
  0x8a   :  { %988 = vmatmul.mubr.msk.f32.vlgmr.msra.gmra.mxu0 %vm15_vm0, %v670_v15 }
  0x8c   :  { %v779_v16 = vpop.permute.xlu0 %778  ;;  %v781_v17 = vpop.permute.xlu1 %780 }
  0x8d   :  { %994 = vmatprep.mubr.msk.f32.mxu1 %vm15_vm0, %v779_v16 }
  0x8e   :  { %995 = vmatmul.mubr.msk.f32.vlgmr.msra.gmra.mxu1 %vm15_vm0, %v781_v17 }
  0xc8   :  { %v947_v18 = vpop.f32.mrf.mxu0 }
  0xc9   :  { %99 = vst.msk [vmem:[%s1388_s2 + $0x48] sm:$0xff] %vm97_vm1, %v947_v18  ;;  %104 = vrot.lane.b32.xlu1 %v947_v18, %s1008_s19 }
  0xca   :  { %v88_v19 = vpop.f32.mrf.mxu0 }
  0xcb   :  { %98 = vst.msk [vmem:[%s1388_s2] sm:$0xff] %vm97_vm1, %v88_v19  ;;  %102 = vrot.lane.b32.xlu0 %v88_v19, %s1008_s19 }
  0xcd   :  { %113 = vrot.lane.b32.xlu1 %v947_v18, %s1005_s14 }
  0xcf   :  { %111 = vrot.lane.b32.xlu0 %v88_v19, %s1005_s14 }
 0x139   :  { %v954_v20 = vpop.f32.mrf.mxu1  ;;  %v961_v21 = vpop.f32.mrf.mxu0 }
 0x13a   :  { %209 = vrot.lane.b32.xlu1 %v954_v20, %s1010_s21  ;;  %341 = vst.msk [vmem:[%s1388_s2 + $0x60] sm:$0xff] %vm97_vm1, %v961_v21 }
 0x13b   :  { %v196_v22 = vpop.f32.mrf.mxu1  ;;  %v311_v23 = vpop.f32.mrf.mxu0 }
 0x13c   :  { %207 = vrot.lane.b32.xlu0 %v196_v22, %s1010_s21  ;;  %340 = vst.msk [vmem:[%s1388_s2 + $0x18] sm:$0xff] %vm97_vm1, %v311_v23  ;;  %v105_v24 = vpop.permute.xlu1 %104 }
 0x13d   :  { %110 = vst.msk [vmem:[%s1388_s2 + $0x48] sm:$0xff] %vm108_vm2, %v105_v24  ;;  %v103_v25 = vpop.permute.xlu0 %102 }
 0x13e   :  { %218 = vrot.lane.b32.xlu1 %v954_v20, %s1007_s1  ;;  %109 = vst.msk [vmem:[%s1388_s2] sm:$0xff] %vm108_vm2, %v103_v25  ;;  %v968_v26 = vpop.f32.mrf.mxu1 }
 0x140   :  { %216 = vrot.lane.b32.xlu0 %v196_v22, %s1007_s1  ;;  %v114_v27 = vpop.permute.xlu1 %113  ;;  %v416_v29 = vpop.f32.mrf.mxu1 }
 0x141   :  { %120 = vst.msk [vmem:[%s1388_s2 + $0x48] sm:$0xff] %vm117_vm3, %v114_v27  ;;  %v112_v28 = vpop.permute.xlu0 %111 }
 0x142   :  { %121 = vst.msk [vmem:[%s1388_s2 + $0x50] sm:$0xff] %vm15_vm0, %v114_v27  ;;  %227 = vrot.lane.b32.xlu1 %v954_v20, %s1004_s13  ;;  %119 = vst.msk [vmem:[%s1388_s2 + $0x8] sm:$0xff] %vm15_vm0, %v112_v28  ;;  %v975_v32 = vpop.f32.mrf.mxu0 }
 0x143   :  { %118 = vst.msk [vmem:[%s1388_s2] sm:$0xff] %vm117_vm3, %v112_v28 }
 0x144   :  { %225 = vrot.lane.b32.xlu0 %v196_v22, %s1004_s13  ;;  %v527_v33 = vpop.f32.mrf.mxu0 }
 0x146   :  { %324 = vrot.lane.b32.xlu1 %v961_v21, %s1009_s20  ;;  %v982_v30 = vpop.f32.mrf.mxu1 }
 0x147   :  { %658 = vst.msk [vmem:[%s1388_s2 + $0x78] sm:$0xff] %vm97_vm1, %v982_v30 }
 0x148   :  { %322 = vrot.lane.b32.xlu0 %v311_v23, %s1009_s20  ;;  %v638_v31 = vpop.f32.mrf.mxu1 }
 0x149   :  { %657 = vst.msk [vmem:[%s1388_s2 + $0x30] sm:$0xff] %vm97_vm1, %v638_v31 }
 0x14a   :  { %333 = vrot.lane.b32.xlu1 %v961_v21, %s1006_s0  ;;  %v989_v34 = vpop.f32.mrf.mxu0 }
 0x14c   :  { %331 = vrot.lane.b32.xlu0 %v311_v23, %s1006_s0  ;;  %v741_v35 = vpop.f32.mrf.mxu0 }
 0x14e   :  { %437 = vrot.lane.b32.xlu1 %v968_v26, %s1005_s14  ;;  %v996_v36 = vpop.f32.mrf.mxu1 }
 0x150   :  { %435 = vrot.lane.b32.xlu0 %v416_v29, %s1005_s14  ;;  %v852_v37 = vpop.f32.mrf.mxu1 }
 0x152   :  { %447 = vrot.lane.b32.xlu1 %v968_v26, %s1010_s21 }
 0x154   :  { %445 = vrot.lane.b32.xlu0 %v416_v29, %s1010_s21 }
 0x156   :  { %548 = vrot.lane.b32.xlu1 %v975_v32, %s1004_s13 }
 0x158   :  { %546 = vrot.lane.b32.xlu0 %v527_v33, %s1004_s13 }
 0x15a   :  { %429 = vrot.lane.b32.xlu1 %v968_v26, %s1008_s19 }
 0x15c   :  { %427 = vrot.lane.b32.xlu0 %v416_v29, %s1008_s19 }
 0x15e   :  { %540 = vrot.lane.b32.xlu1 %v975_v32, %s1007_s1 }
 0x160   :  { %538 = vrot.lane.b32.xlu0 %v527_v33, %s1007_s1 }
 0x162   :  { %558 = vrot.lane.b32.xlu1 %v975_v32, %s1009_s20 }
 0x164   :  { %556 = vrot.lane.b32.xlu0 %v527_v33, %s1009_s20 }
 0x166   :  { %754 = vrot.lane.b32.xlu1 %v989_v34, %s1005_s14 }
 0x168   :  { %752 = vrot.lane.b32.xlu0 %v741_v35, %s1005_s14 }
 0x16a   :  { %764 = vrot.lane.b32.xlu1 %v989_v34, %s1010_s21 }
 0x16c   :  { %762 = vrot.lane.b32.xlu0 %v741_v35, %s1010_s21 }
 0x16e   :  { %661 = vrot.lane.b32.xlu1 %v982_v30, %s1008_s19 }
 0x170   :  { %659 = vrot.lane.b32.xlu0 %v638_v31, %s1008_s19 }
 0x172   :  { %772 = vrot.lane.b32.xlu1 %v989_v34, %s1007_s1 }
 0x174   :  { %770 = vrot.lane.b32.xlu0 %v741_v35, %s1007_s1 }
 0x176   :  { %651 = vrot.lane.b32.xlu1 %v982_v30, %s1006_s0 }
 0x178   :  { %649 = vrot.lane.b32.xlu0 %v638_v31, %s1006_s0 }
 0x17a   :  { %865 = vrot.lane.b32.xlu1 %v996_v36, %s1004_s13 }
 0x17c   :  { %863 = vrot.lane.b32.xlu0 %v852_v37, %s1004_s13 }
 0x17e   :  { %875 = vrot.lane.b32.xlu1 %v996_v36, %s1009_s20 }
 0x180   :  { %873 = vrot.lane.b32.xlu0 %v852_v37, %s1009_s20 }
 0x182   :  { %883 = vrot.lane.b32.xlu1 %v996_v36, %s1006_s0 }
 0x184   :  { %881 = vrot.lane.b32.xlu0 %v852_v37, %s1006_s0 }
 0x1ac   :  { %v210_v38 = vpop.permute.xlu1 %209 }
 0x1ad   :  { %215 = vst.msk [vmem:[%s1388_s2 + $0x50] sm:$0xff] %vm213_vm4, %v210_v38 }
 0x1ae   :  { %v208_v39 = vpop.permute.xlu0 %207 }
 0x1af   :  { %214 = vst.msk [vmem:[%s1388_s2 + $0x8] sm:$0xff] %vm213_vm4, %v208_v39 }
 0x1b0   :  { %v219_v40 = vpop.permute.xlu1 %218 }
 0x1b1   :  { %224 = vst.msk [vmem:[%s1388_s2 + $0x50] sm:$0xff] %vm222_vm5, %v219_v40 }
 0x1b2   :  { %v217_v41 = vpop.permute.xlu0 %216 }
 0x1b3   :  { %223 = vst.msk [vmem:[%s1388_s2 + $0x8] sm:$0xff] %vm222_vm5, %v217_v41 }
 0x1b4   :  { %v228_v42 = vpop.permute.xlu1 %227 }
 0x1b5   :  { %235 = vst.msk [vmem:[%s1388_s2 + $0x50] sm:$0xff] %vm231_vm6, %v228_v42 }
 0x1b6   :  { %236 = vst.msk [vmem:[%s1388_s2 + $0x58] sm:$0xff] %vm233_vm7, %v228_v42  ;;  %v226_v43 = vpop.permute.xlu0 %225 }
 0x1b7   :  { %232 = vst.msk [vmem:[%s1388_s2 + $0x8] sm:$0xff] %vm231_vm6, %v226_v43 }
 0x1b8   :  { %234 = vst.msk [vmem:[%s1388_s2 + $0x10] sm:$0xff] %vm233_vm7, %v226_v43  ;;  %v325_v44 = vpop.permute.xlu1 %324 }
 0x1b9   :  { %330 = vst.msk [vmem:[%s1388_s2 + $0x58] sm:$0xff] %vm328_vm8, %v325_v44 }
 0x1ba   :  { %v323_v45 = vpop.permute.xlu0 %322 }
 0x1bb   :  { %329 = vst.msk [vmem:[%s1388_s2 + $0x10] sm:$0xff] %vm328_vm8, %v323_v45 }
 0x1bc   :  { %v334_v46 = vpop.permute.xlu1 %333 }
 0x1bd   :  { %339 = vst.msk [vmem:[%s1388_s2 + $0x58] sm:$0xff] %vm337_vm9, %v334_v46 }
 0x1be   :  { %v332_v47 = vpop.permute.xlu0 %331 }
 0x1bf   :  { %338 = vst.msk [vmem:[%s1388_s2 + $0x10] sm:$0xff] %vm337_vm9, %v332_v47 }
 0x1c0   :  { %v438_v48 = vpop.permute.xlu1 %437 }
 0x1c1   :  { %444 = vst.msk [vmem:[%s1388_s2 + $0x68] sm:$0xff] %vm15_vm0, %v438_v48 }
 0x1c2   :  { %v436_v49 = vpop.permute.xlu0 %435 }
 0x1c3   :  { %442 = vst.msk [vmem:[%s1388_s2 + $0x20] sm:$0xff] %vm15_vm0, %v436_v49 }
 0x1c4   :  { %v448_v50 = vpop.permute.xlu1 %447 }
 0x1c5   :  { %452 = vst.msk [vmem:[%s1388_s2 + $0x68] sm:$0xff] %vm213_vm4, %v448_v50 }
 0x1c6   :  { %v446_v51 = vpop.permute.xlu0 %445 }
 0x1c7   :  { %451 = vst.msk [vmem:[%s1388_s2 + $0x20] sm:$0xff] %vm213_vm4, %v446_v51 }
 0x1c8   :  { %v549_v52 = vpop.permute.xlu1 %548 }
 0x1c9   :  { %555 = vst.msk [vmem:[%s1388_s2 + $0x70] sm:$0xff] %vm233_vm7, %v549_v52 }
 0x1ca   :  { %v547_v53 = vpop.permute.xlu0 %546 }
 0x1cb   :  { %553 = vst.msk [vmem:[%s1388_s2 + $0x28] sm:$0xff] %vm233_vm7, %v547_v53 }
 0x1cc   :  { %v430_v54 = vpop.permute.xlu1 %429 }
 0x1cd   :  { %434 = vst.msk [vmem:[%s1388_s2 + $0x60] sm:$0xff] %vm108_vm2, %v430_v54 }
 0x1ce   :  { %443 = vst.msk [vmem:[%s1388_s2 + $0x60] sm:$0xff] %vm117_vm3, %v438_v48  ;;  %v428_v55 = vpop.permute.xlu0 %427 }
 0x1cf   :  { %433 = vst.msk [vmem:[%s1388_s2 + $0x18] sm:$0xff] %vm108_vm2, %v428_v55 }
 0x1d0   :  { %441 = vst.msk [vmem:[%s1388_s2 + $0x18] sm:$0xff] %vm117_vm3, %v436_v49  ;;  %v541_v56 = vpop.permute.xlu1 %540 }
 0x1d1   :  { %545 = vst.msk [vmem:[%s1388_s2 + $0x68] sm:$0xff] %vm222_vm5, %v541_v56 }
 0x1d2   :  { %554 = vst.msk [vmem:[%s1388_s2 + $0x68] sm:$0xff] %vm231_vm6, %v549_v52  ;;  %v539_v57 = vpop.permute.xlu0 %538 }
 0x1d3   :  { %544 = vst.msk [vmem:[%s1388_s2 + $0x20] sm:$0xff] %vm222_vm5, %v539_v57 }
 0x1d4   :  { %552 = vst.msk [vmem:[%s1388_s2 + $0x20] sm:$0xff] %vm231_vm6, %v547_v53  ;;  %v559_v58 = vpop.permute.xlu1 %558 }
 0x1d5   :  { %563 = vst.msk [vmem:[%s1388_s2 + $0x70] sm:$0xff] %vm328_vm8, %v559_v58 }
 0x1d6   :  { %v557_v59 = vpop.permute.xlu0 %556 }
 0x1d7   :  { %562 = vst.msk [vmem:[%s1388_s2 + $0x28] sm:$0xff] %vm328_vm8, %v557_v59 }
 0x1d8   :  { %v755_v60 = vpop.permute.xlu1 %754 }
 0x1d9   :  { %761 = vst.msk [vmem:[%s1388_s2 + $0x80] sm:$0xff] %vm15_vm0, %v755_v60 }
 0x1da   :  { %v753_v61 = vpop.permute.xlu0 %752 }
 0x1db   :  { %759 = vst.msk [vmem:[%s1388_s2 + $0x38] sm:$0xff] %vm15_vm0, %v753_v61 }
 0x1dc   :  { %v765_v62 = vpop.permute.xlu1 %764 }
 0x1dd   :  { %769 = vst.msk [vmem:[%s1388_s2 + $0x80] sm:$0xff] %vm213_vm4, %v765_v62 }
 0x1de   :  { %v763_v63 = vpop.permute.xlu0 %762 }
 0x1df   :  { %768 = vst.msk [vmem:[%s1388_s2 + $0x38] sm:$0xff] %vm213_vm4, %v763_v63 }
 0x1e0   :  { %v662_v0 = vpop.permute.xlu1 %661 }
 0x1e1   :  { %666 = vst.msk [vmem:[%s1388_s2 + $0x78] sm:$0xff] %vm108_vm2, %v662_v0 }
 0x1e2   :  { %760 = vst.msk [vmem:[%s1388_s2 + $0x78] sm:$0xff] %vm117_vm3, %v755_v60  ;;  %v660_v1 = vpop.permute.xlu0 %659 }
 0x1e3   :  { %665 = vst.msk [vmem:[%s1388_s2 + $0x30] sm:$0xff] %vm108_vm2, %v660_v1 }
 0x1e4   :  { %758 = vst.msk [vmem:[%s1388_s2 + $0x30] sm:$0xff] %vm117_vm3, %v753_v61  ;;  %v773_v2 = vpop.permute.xlu1 %772 }
 0x1e5   :  { %777 = vst.msk [vmem:[%s1388_s2 + $0x80] sm:$0xff] %vm222_vm5, %v773_v2 }
 0x1e6   :  { %v771_v3 = vpop.permute.xlu0 %770 }
 0x1e7   :  { %776 = vst.msk [vmem:[%s1388_s2 + $0x38] sm:$0xff] %vm222_vm5, %v771_v3 }
 0x1e8   :  { %v652_v4 = vpop.permute.xlu1 %651 }
 0x1e9   :  { %656 = vst.msk [vmem:[%s1388_s2 + $0x70] sm:$0xff] %vm337_vm9, %v652_v4 }
 0x1ea   :  { %v650_v5 = vpop.permute.xlu0 %649 }
 0x1eb   :  { %655 = vst.msk [vmem:[%s1388_s2 + $0x28] sm:$0xff] %vm337_vm9, %v650_v5 }
 0x1ec   :  { %v866_v6 = vpop.permute.xlu1 %865 }
 0x1ed   :  { %871 = vst.msk [vmem:[%s1388_s2 + $0x80] sm:$0xff] %vm231_vm6, %v866_v6 }
 0x1ee   :  { %872 = vst.msk [vmem:[%s1388_s2 + $0x88] sm:$0xff] %vm233_vm7, %v866_v6  ;;  %v864_v7 = vpop.permute.xlu0 %863 }
 0x1ef   :  { %869 = vst.msk [vmem:[%s1388_s2 + $0x38] sm:$0xff] %vm231_vm6, %v864_v7 }
 0x1f0   :  { %870 = vst.msk [vmem:[%s1388_s2 + $0x40] sm:$0xff] %vm233_vm7, %v864_v7  ;;  %v876_v8 = vpop.permute.xlu1 %875 }
 0x1f1   :  { %880 = vst.msk [vmem:[%s1388_s2 + $0x88] sm:$0xff] %vm328_vm8, %v876_v8 }
 0x1f2   :  { %v874_v9 = vpop.permute.xlu0 %873 }
 0x1f3   :  { %879 = vst.msk [vmem:[%s1388_s2 + $0x40] sm:$0xff] %vm328_vm8, %v874_v9 }
 0x1f4   :  { %v884_v10 = vpop.permute.xlu1 %883 }
 0x1f5   :  { %888 = vst.msk [vmem:[%s1388_s2 + $0x88] sm:$0xff] %vm337_vm9, %v884_v10 }
 0x1f6   :  { %v882_v11 = vpop.permute.xlu0 %881 }
 0x1f7   :  { %887 = vst.msk [vmem:[%s1388_s2 + $0x40] sm:$0xff] %vm337_vm9, %v882_v11 }

</bundles_post_ra>
